<compile_context>
chip_gen: v7x
topology: tpu7x:2x2x1
jax: 0.10.0
libtpu: 0.0.40
codegen_flags: <defaults>
</compile_context>

<pallas_src>
import jax
import jax.numpy as jnp
from jax.experimental import pallas as pl
from jax.experimental.pallas import tpu as pltpu


def _round_up(x, m):
    return ((x + m - 1) // m) * m


def _return_predictor_kernel(x_ref, w1_ref, b1_ref, w2_ref, b2_ref,
                             w3_ref, b3_ref, out_ref):
    # Layer 1 (input normalization already folded into w1/b1 by the wrapper).
    h = jnp.dot(x_ref[...], w1_ref[...],
                preferred_element_type=jnp.float32) + b1_ref[...]
    h = jnp.maximum(h, 0.0)

    # Layer 2.
    h = jnp.dot(h.astype(w2_ref.dtype), w2_ref[...],
                preferred_element_type=jnp.float32) + b2_ref[...]
    h = jnp.maximum(h, 0.0)

    # Output head (hidden -> 1): VPU multiply + lane reduction (MXU-free).
    out = jnp.sum(h * w3_ref[...], axis=-1, keepdims=True) + b3_ref[...]
    out_ref[...] = out.astype(out_ref.dtype)


def return_predictor_forward(x, input_mean, input_std,
                             w1, b1, w2, b2, w3, b3,
                             *, batch_tile=512, matmul_dtype=jnp.bfloat16):
    """Fused ReturnPredictor.forward (return_samples=False, quantize=False).

    x:  (B, state_dim)
    w1: (state_dim, hidden), w2: (hidden, hidden), w3: (hidden, 1)
    biases / mean / std: 1-D (or (1, N)) arrays.
    """
    B, state_dim = x.shape
    hidden = w1.shape[1]
    num_classes = w3.shape[1]
    if num_classes != 1:
        # TODO(synk): quantize=True multi-class head (hidden -> num_classes
        # matmul); kernel is specialized to the default num_classes=1 path.
        raise NotImplementedError("kernel specialized to num_classes=1")

    f32 = jnp.float32
    mean = jnp.reshape(input_mean, (1, state_dim)).astype(f32)
    std = jnp.reshape(input_std, (1, state_dim)).astype(f32)
    inv_std = 1.0 / (std + 1e-6)

    # Fold normalization into layer 1 (done once in f32, outside the kernel):
    #   (x - mean)*inv_std @ W1 + b1 == x @ (inv_std[:,None]*W1) + (b1 - (mean*inv_std)@W1)
    w1_fold = w1.astype(f32) * jnp.reshape(inv_std, (state_dim, 1))
    b1_fold = jnp.reshape(b1, (1, hidden)).astype(f32) - (mean * inv_std) @ w1.astype(f32)
    b2_f = jnp.reshape(b2, (1, hidden)).astype(f32)
    w3_row = jnp.reshape(w3.astype(f32), (1, hidden))   # (hidden,1) -> (1,hidden)
    b3_f = jnp.reshape(b3, (1, 1)).astype(f32)

    # Matmul operand dtype (bf16 halves the x HBM stream; f32 accumulation).
    x_mm = x.astype(matmul_dtype)
    w1_mm = w1_fold.astype(matmul_dtype)
    w2_mm = w2.astype(matmul_dtype)

    # Tile the batch: big tiles amortize per-step overhead; keep the sublane
    # (second-minor) dimension a legal multiple for the matmul dtype.
    min_tile = 8 * (4 // jnp.dtype(matmul_dtype).itemsize)   # f32->8, bf16->16
    tile = max(min_tile, min(int(batch_tile), _round_up(B, min_tile)))
    tile = _round_up(tile, min_tile)
    b_pad = _round_up(B, tile)
    if b_pad != B:
        x_mm = jnp.pad(x_mm, ((0, b_pad - B), (0, 0)))
    grid = (b_pad // tile,)

    rep = lambda shape: pl.BlockSpec(shape, lambda i: (0, 0))

    out = pl.pallas_call(
        _return_predictor_kernel,
        out_shape=jax.ShapeDtypeStruct((b_pad, 1), jnp.float32),
        grid_spec=pltpu.PrefetchScalarGridSpec(
            num_scalar_prefetch=0,
            grid=grid,
            in_specs=[
                pl.BlockSpec((tile, state_dim), lambda i: (i, 0)),  # x tile
                rep((state_dim, hidden)),   # w1 (normalization folded in)
                rep((1, hidden)),           # b1 (normalization folded in)
                rep((hidden, hidden)),      # w2
                rep((1, hidden)),           # b2
                rep((1, hidden)),           # w3 as a row vector
                rep((1, 1)),                # b3
            ],
            out_specs=pl.BlockSpec((tile, 1), lambda i: (i, 0)),
        ),
        compiler_params=pltpu.CompilerParams(
            dimension_semantics=("parallel",)),   # batch axis shards across TCs (v7x)
    )(x_mm, w1_mm, b1_fold, w2_mm, b2_f, w3_row, b3_f)

    return out[:B]


def _reference_forward(x, input_mean, input_std, w1, b1, w2, b2, w3, b3):
    xn = (x - jnp.reshape(input_mean, (1, -1))) / (jnp.reshape(input_std, (1, -1)) + 1e-6)
    h = jnp.maximum(xn @ w1 + b1, 0.0)
    h = jnp.maximum(h @ w2 + b2, 0.0)
    return h @ w3 + b3


if __name__ == "__main__":
    # Small shapes consistent with the module defaults.
    B = 24            # batch (deliberately not a multiple of the tile -> exercises padding)
    STATE_DIM = 32    # state_dim
    HIDDEN = 64       # hidden_size
    NUM_CLASSES = 1   # quantize=False -> num_classes=1

    key = jax.random.PRNGKey(0)
    kx, k1, k2, k3, km, ks = jax.random.split(key, 6)

    # Deterministic synthetic parameters (not a checkpoint load).
    x = jax.random.normal(kx, (B, STATE_DIM), dtype=jnp.float32)
    input_mean = 0.1 * jax.random.normal(km, (STATE_DIM,), dtype=jnp.float32)
    input_std = 1.0 + 0.1 * jnp.abs(jax.random.normal(ks, (STATE_DIM,), dtype=jnp.float32))

    w1 = 0.1 * jax.random.normal(k1, (STATE_DIM, HIDDEN), dtype=jnp.float32)
    b1 = 0.01 * jnp.ones((HIDDEN,), dtype=jnp.float32)
    w2 = 0.1 * jax.random.normal(k2, (HIDDEN, HIDDEN), dtype=jnp.float32)
    b2 = 0.01 * jnp.ones((HIDDEN,), dtype=jnp.float32)
    w3 = 0.1 * jax.random.normal(k3, (HIDDEN, NUM_CLASSES), dtype=jnp.float32)
    b3 = 0.05 * jnp.ones((NUM_CLASSES,), dtype=jnp.float32)

    # TODO(synk): return_samples=True branch (Normal sampling with exp(log_std),
    # target mean/std rescale) is stochastic inference-time glue, not kernel work.

    ref = _reference_forward(x, input_mean, input_std, w1, b1, w2, b2, w3, b3)

    # Exact-path check (f32 matmuls): tight tolerance.
    out_f32 = return_predictor_forward(x, input_mean, input_std,
                                       w1, b1, w2, b2, w3, b3,
                                       matmul_dtype=jnp.float32)
    out_f32 = jax.block_until_ready(out_f32)
    assert out_f32.shape == (B, NUM_CLASSES)
    assert jnp.allclose(out_f32, ref, atol=1e-4, rtol=1e-4), "f32 mismatch vs reference"

    # Default fast path (bf16 matmul operands, f32 accumulation): loose tolerance.
    out_bf16 = return_predictor_forward(x, input_mean, input_std,
                                        w1, b1, w2, b2, w3, b3)
    out_bf16 = jax.block_until_ready(out_bf16)
    assert out_bf16.shape == (B, NUM_CLASSES)
    assert jnp.allclose(out_bf16, ref, atol=5e-2, rtol=5e-2), "bf16 mismatch vs reference"

    print("KERNEL_OK")
</pallas_src>

<mosaic_0001>
module attributes {stable_mosaic.version = 11 : i64} {
  func.func @_return_predictor_kernel(%arg0: i32, %arg1: memref<24x32xf32, #tpu.memory_space<vmem>>, %arg2: memref<32x64xf32, #tpu.memory_space<vmem>>, %arg3: memref<1x64xf32, #tpu.memory_space<vmem>>, %arg4: memref<64x64xf32, #tpu.memory_space<vmem>>, %arg5: memref<1x64xf32, #tpu.memory_space<vmem>>, %arg6: memref<1x64xf32, #tpu.memory_space<vmem>>, %arg7: memref<1x1xf32, #tpu.memory_space<vmem>>, %arg8: memref<24x1xf32, #tpu.memory_space<vmem>>) attributes {dimension_semantics = [#tpu.dimension_semantics<parallel>], iteration_bounds = array<i64: 1>, scalar_prefetch = 0 : i64, scratch_operands = 0 : i64, tpu.core_type = #tpu.core_type<tc>, window_params = [{transform_indices = @transform_0, window_bounds = array<i64: 24, 32>}, {pipeline_mode = #tpu.pipeline_mode<synchronous>, transform_indices = @transform_1, window_bounds = array<i64: 32, 64>}, {pipeline_mode = #tpu.pipeline_mode<synchronous>, transform_indices = @transform_2, window_bounds = array<i64: 1, 64>}, {pipeline_mode = #tpu.pipeline_mode<synchronous>, transform_indices = @transform_3, window_bounds = array<i64: 64, 64>}, {pipeline_mode = #tpu.pipeline_mode<synchronous>, transform_indices = @transform_4, window_bounds = array<i64: 1, 64>}, {pipeline_mode = #tpu.pipeline_mode<synchronous>, transform_indices = @transform_5, window_bounds = array<i64: 1, 64>}, {pipeline_mode = #tpu.pipeline_mode<synchronous>, transform_indices = @transform_6, window_bounds = array<i64: 1, 1>}, {transform_indices = @transform_7, window_bounds = array<i64: 24, 1>}]} {
    %c0 = arith.constant 0 : index
    %c0_0 = arith.constant 0 : index
    %0 = vector.load %arg1[%c0, %c0_0] : memref<24x32xf32, #tpu.memory_space<vmem>>, vector<24x32xf32>
    %c0_1 = arith.constant 0 : index
    %c0_2 = arith.constant 0 : index
    %1 = vector.load %arg2[%c0_1, %c0_2] : memref<32x64xf32, #tpu.memory_space<vmem>>, vector<32x64xf32>
    %cst = arith.constant dense<0.000000e+00> : vector<24x64xf32>
    %2 = tpu.matmul %0, %1, %cst {dimension_numbers = #tpu.dot_dimension_numbers<[1], [0], [0], [1], [0, 0, 1, 1], [], []>} : vector<24x32xf32>, vector<32x64xf32>, vector<24x64xf32> -> vector<24x64xf32>
    %c0_3 = arith.constant 0 : index
    %c0_4 = arith.constant 0 : index
    %3 = vector.load %arg3[%c0_3, %c0_4] : memref<1x64xf32, #tpu.memory_space<vmem>>, vector<1x64xf32>
    %4 = vector.broadcast %3 : vector<1x64xf32> to vector<24x64xf32>
    %5 = arith.addf %2, %4 : vector<24x64xf32>
    %cst_5 = arith.constant 0.000000e+00 : f32
    %6 = vector.broadcast %cst_5 : f32 to vector<24x64xf32>
    %7 = arith.maximumf %5, %6 : vector<24x64xf32>
    %c0_6 = arith.constant 0 : index
    %c0_7 = arith.constant 0 : index
    %8 = vector.load %arg4[%c0_6, %c0_7] : memref<64x64xf32, #tpu.memory_space<vmem>>, vector<64x64xf32>
    %cst_8 = arith.constant dense<0.000000e+00> : vector<24x64xf32>
    %9 = tpu.matmul %7, %8, %cst_8 {dimension_numbers = #tpu.dot_dimension_numbers<[1], [0], [0], [1], [0, 0, 1, 1], [], []>} : vector<24x64xf32>, vector<64x64xf32>, vector<24x64xf32> -> vector<24x64xf32>
    %c0_9 = arith.constant 0 : index
    %c0_10 = arith.constant 0 : index
    %10 = vector.load %arg5[%c0_9, %c0_10] : memref<1x64xf32, #tpu.memory_space<vmem>>, vector<1x64xf32>
    %11 = vector.broadcast %10 : vector<1x64xf32> to vector<24x64xf32>
    %12 = arith.addf %9, %11 : vector<24x64xf32>
    %cst_11 = arith.constant 0.000000e+00 : f32
    %13 = vector.broadcast %cst_11 : f32 to vector<24x64xf32>
    %14 = arith.maximumf %12, %13 : vector<24x64xf32>
    %c0_12 = arith.constant 0 : index
    %c0_13 = arith.constant 0 : index
    %15 = vector.load %arg6[%c0_12, %c0_13] : memref<1x64xf32, #tpu.memory_space<vmem>>, vector<1x64xf32>
    %16 = vector.broadcast %15 : vector<1x64xf32> to vector<24x64xf32>
    %17 = arith.mulf %14, %16 : vector<24x64xf32>
    %cst_14 = arith.constant dense<0.000000e+00> : vector<24xf32>
    %18 = vector.multi_reduction <add>, %17, %cst_14 [1] : vector<24x64xf32> to vector<24xf32>
    %19 = vector.shape_cast %18 : vector<24xf32> to vector<24x1xf32>
    %c0_15 = arith.constant 0 : index
    %c0_16 = arith.constant 0 : index
    %20 = vector.load %arg7[%c0_15, %c0_16] : memref<1x1xf32, #tpu.memory_space<vmem>>, vector<1x1xf32>
    %21 = vector.broadcast %20 : vector<1x1xf32> to vector<24x1xf32>
    %22 = arith.addf %19, %21 : vector<24x1xf32>
    %c0_17 = arith.constant 0 : index
    %c0_18 = arith.constant 0 : index
    %23 = vector.load %arg8[%c0_17, %c0_18] : memref<24x1xf32, #tpu.memory_space<vmem>>, vector<24x1xf32>
    tpu.vector_store %arg8[%c0_17, %c0_18], %22 {strides = array<i32>} : memref<24x1xf32, #tpu.memory_space<vmem>>, vector<24x1xf32>,
    return
  }
  func.func @transform_0(%arg0: i32) -> (i32, i32) {
    %c0_i32 = arith.constant 0 : i32
    %c0_i32_0 = arith.constant 0 : i32
    return %arg0, %c0_i32 : i32, i32
  }
  func.func @transform_1(%arg0: i32) -> (i32, i32) {
    %c0_i32 = arith.constant 0 : i32
    %c0_i32_0 = arith.constant 0 : i32
    %c0_i32_1 = arith.constant 0 : i32
    return %c0_i32, %c0_i32_0 : i32, i32
  }
  func.func @transform_2(%arg0: i32) -> (i32, i32) {
    %c0_i32 = arith.constant 0 : i32
    %c0_i32_0 = arith.constant 0 : i32
    %c0_i32_1 = arith.constant 0 : i32
    return %c0_i32, %c0_i32_0 : i32, i32
  }
  func.func @transform_3(%arg0: i32) -> (i32, i32) {
    %c0_i32 = arith.constant 0 : i32
    %c0_i32_0 = arith.constant 0 : i32
    %c0_i32_1 = arith.constant 0 : i32
    return %c0_i32, %c0_i32_0 : i32, i32
  }
  func.func @transform_4(%arg0: i32) -> (i32, i32) {
    %c0_i32 = arith.constant 0 : i32
    %c0_i32_0 = arith.constant 0 : i32
    %c0_i32_1 = arith.constant 0 : i32
    return %c0_i32, %c0_i32_0 : i32, i32
  }
  func.func @transform_5(%arg0: i32) -> (i32, i32) {
    %c0_i32 = arith.constant 0 : i32
    %c0_i32_0 = arith.constant 0 : i32
    %c0_i32_1 = arith.constant 0 : i32
    return %c0_i32, %c0_i32_0 : i32, i32
  }
  func.func @transform_6(%arg0: i32) -> (i32, i32) {
    %c0_i32 = arith.constant 0 : i32
    %c0_i32_0 = arith.constant 0 : i32
    %c0_i32_1 = arith.constant 0 : i32
    return %c0_i32, %c0_i32_0 : i32, i32
  }
  func.func @transform_7(%arg0: i32) -> (i32, i32) {
    %c0_i32 = arith.constant 0 : i32
    %c0_i32_0 = arith.constant 0 : i32
    return %arg0, %c0_i32 : i32, i32
  }
}

</mosaic_0001>

<bundles_post_ra>
// kernel: tpu_custom_call.1
= control target key start
LH: loop header
LB: loop body
LE: loop exit
PB: predicated region body
PF: predicated region fallthrough
CT: control target
= control target key end

     0   :  { %s622_s0 = inlined_call_operand.hbm [shape: f32[24,32], index: 0, kind: input, shape index: {}]   ;;  %s623_s1 = inlined_call_operand.hbm [shape: f32[32,64], index: 1, kind: input, shape index: {}]   ;;  %s624_s2 = inlined_call_operand.vmem [shape: f32[1,64], index: 2, kind: input, shape index: {}]   ;;  %s625_s3 = inlined_call_operand.hbm [shape: f32[64,64], index: 3, kind: input, shape index: {}]   ;;  %s626_s4 = inlined_call_operand.vmem [shape: f32[1,64], index: 4, kind: input, shape index: {}]   ;;  %s627_s5 = inlined_call_operand.vmem [shape: f32[1,64], index: 5, kind: input, shape index: {}]   ;;  %s628_s6 = inlined_call_operand.<no memory space> [shape: f32[1,1], index: 6, kind: input, shape index: {}]   ;;  %s629_s7 = inlined_call_operand.vmem [shape: f32[24,1], index: 7, kind: output, shape index: {}]  }
   0x1   :  { %v12_v0 = vstv %s628_s6 }
   0x2   :  { %13 = vst [vmem:[#allocation2] sm:$0x1] %v12_v0 }
   0x3   :  { %14 = vsyncpa [#allocation4], 0 }
   0x4   :  { %15 = vsyncpa [#allocation6], 0  ;;  %s489_s26 = smov [#allocation5]   ;;  %s490_s28 = smov [#allocation3]  }
   0x5   :  { %s33_s27 = sshll.u32 %s489_s26, 4  ;;  %s21_s29 = sshll.u32 %s490_s28, 4  ;;  %s34_s27 = int_to_ptr.vmem [resolvable:$true] %s33_s27  ;;  %s540_s29 = int_to_ptr.vmem [resolvable:$true] %s21_s29 }
   0x6   :  { %s419_s9 = scalar_lea.hbm %s623_s1, 512 }
   0x7   :  { %p420_p0 = scmp.ne.s32.totalorder %s623_s1, %s419_s9  ;;  %p423_p1 = scmp.lt.u32.totalorder %s419_s9, %s623_s1 }
   0x9   :  { %p425_p2 = pnand %p423_p1, %p420_p0 }
   0xb   :  { %428 = shalt.err (!%p425_p2)
}
   0xc   :  { %s429_s13 = scalar_lea.vmem %s34_s27, 512  ;;  %p434_p4 = scmp.lt.s32.totalorder %s34_s27, %s34_s27 }
   0xd   :  { %p430_p3 = scmp.ne.s32.totalorder %s34_s27, %s429_s13  ;;  %p435_p5 = scmp.lt.s32.totalorder %s429_s13, %s429_s13 }
   0xf   :  { %p436_p6 = por %p435_p5, %p434_p4 }
  0x11   :  { %p437_p7 = pnand %p436_p6, %p430_p3 }
  0x13   :  { %440 = shalt.err (!%p437_p7)
}
  0x14   :  { %s491_s14 = smov 128   ;;  %s492_s15 = smov 8  }
  0x15   :  { %39 = dma.hbm_to_vmem [thread:$0]  %s623_s1, 512, %s34_s27, [#allocation6], %s491_s14, %s491_s14, %s492_s15  }
  0x16   :  { %s441_s20 = scalar_lea.hbm %s622_s0, 384 }
  0x17   :  { %p442_p8 = scmp.ne.s32.totalorder %s622_s0, %s441_s20  ;;  %p445_p9 = scmp.lt.u32.totalorder %s441_s20, %s622_s0 }
  0x19   :  { %p447_p10 = pnand %p445_p9, %p442_p8 }
  0x1b   :  { %450 = shalt.err (!%p447_p10)
}
  0x1c   :  { %s451_s25 = scalar_lea.vmem %s540_s29, 384  ;;  %p456_p12 = scmp.lt.s32.totalorder %s540_s29, %s540_s29 }
  0x1d   :  { %p452_p11 = scmp.ne.s32.totalorder %s540_s29, %s451_s25  ;;  %p457_p13 = scmp.lt.s32.totalorder %s451_s25, %s451_s25 }
  0x1f   :  { %p458_p0 = por %p457_p13, %p456_p12 }
  0x21   :  { %p459_p1 = pnand %p458_p0, %p452_p11 }
  0x23   :  { %462 = shalt.err (!%p459_p1)
}
  0x24   :  { %27 = dma.hbm_to_vmem [thread:$0]  %s622_s0, 384, %s540_s29, [#allocation4], %s491_s14, %s491_s14, %s492_s15  }
  0x25   :  { %s493_s27 = smov [#allocation7]   ;;  %s463_s9 = scalar_lea.hbm %s625_s3, 1024 }
  0x26   :  { %s47_s28 = sshll.u32 %s493_s27, 4  ;;  %p464_p2 = scmp.ne.s32.totalorder %s625_s3, %s463_s9  ;;  %s48_s28 = int_to_ptr.vmem [resolvable:$true] %s47_s28 }
  0x27   :  { %p467_p3 = scmp.lt.u32.totalorder %s463_s9, %s625_s3 }
  0x29   :  { %p469_p4 = pnand %p467_p3, %p464_p2 }
  0x2b   :  { %472 = shalt.err (!%p469_p4)
}
  0x2c   :  { %s473_s13 = scalar_lea.vmem %s48_s28, 1024  ;;  %p478_p6 = scmp.lt.s32.totalorder %s48_s28, %s48_s28 }
  0x2d   :  { %p474_p5 = scmp.ne.s32.totalorder %s48_s28, %s473_s13  ;;  %p479_p7 = scmp.lt.s32.totalorder %s473_s13, %s473_s13 }
  0x2f   :  { %p480_p8 = por %p479_p7, %p478_p6 }
  0x31   :  { %p481_p9 = pnand %p480_p8, %p474_p5 }
  0x33   :  { %484 = shalt.err (!%p481_p9)
}
  0x34   :  { %53 = dma.hbm_to_vmem [thread:$0]  %s625_s3, 1024, %s48_s28, [#allocation6], %s491_s14, %s491_s14, %s492_s15  }
  0x35   :  { %485 = dma.done.wait [#allocation4], 384  }
  0x36   :  { %486 = vsyncadd [#allocation4], 4294966912 }
  0x37   :  { %487 = dma.done.wait [#allocation6], 1536  }
  0x38   :  { %488 = vsyncadd [#allocation6], 4294965760  ;;  %v494_v1 = vmov 0.0|0.0   ;;  %vm495_vm0 = vmmov 0   ;;  %v496_v2 = vmov 0.0   ;;  %v72_v3 = vld [vmem:[#allocation5] sm:$0xff] }
  0x39   :  { %393 = vmatprep.subr.bf16.mxu0 %v494_v1  ;;  %359 = vmatprep.mubr.msk.f32.mxu0 %vm495_vm0, %v496_v2  ;;  %v73_v4 = vld [vmem:[#allocation5 + $0x8] sm:$0xff]  ;;  %v74_v5 = vld [vmem:[#allocation5 + $0x10] sm:$0xff]  ;;  %v75_v7 = vld [vmem:[#allocation5 + $0x18] sm:$0xff]  ;;  %vm83_vm1 = vcmask 261120   ;;  %vm191_vm2 = vcmask 523264   ;;  %vm313_vm3 = vcmask 7168  }
  0x3a   :  { %399 = vmatprep.subr.bf16.mxu1 %v494_v1  ;;  %384 = vmatprep.mubr.msk.f32.mxu1 %vm495_vm0, %v496_v2  ;;  %v394_v6 = vpack.c.bf16 %v73_v4, %v72_v3  ;;  %v176_v8 = vld [vmem:[#allocation7] sm:$0xff]  ;;  %v177_v9 = vld [vmem:[#allocation7 + $0x8] sm:$0xff]  ;;  %v397_v10 = vpack.c.bf16 %v75_v7, %v74_v5  ;;  %v178_v12 = vld [vmem:[#allocation7 + $0x10] sm:$0xff] }
  0x3b   :  { %v400_v11 = vpack.c.bf16 %v177_v9, %v176_v8  ;;  %v179_v13 = vld [vmem:[#allocation7 + $0x18] sm:$0xff]  ;;  %v180_v15 = vld [vmem:[#allocation7 + $0x20] sm:$0xff]  ;;  %v181_v16 = vld [vmem:[#allocation7 + $0x28] sm:$0xff] }
  0x3c   :  { %395 = vmatpush3.bf16.msra.mxu0 %v394_v6  ;;  %v403_v14 = vpack.c.bf16 %v179_v13, %v178_v12  ;;  %v69_v17 = vld [vmem:[#allocation3] sm:$0xff]  ;;  %v406_v18 = vpack.c.bf16 %v181_v16, %v180_v15  ;;  %v70_v19 = vld [vmem:[#allocation3 + $0x8] sm:$0xff]  ;;  %v71_v20 = vld [vmem:[#allocation3 + $0x10] sm:$0xff] }
  0x3d   :  { %396 = vmatprep.subr.bf16.mxu0 %v494_v1  ;;  %401 = vmatpush3.bf16.msra.mxu1 %v400_v11  ;;  %v182_v21 = vld [vmem:[#allocation7 + $0x30] sm:$0xff]  ;;  %v183_v22 = vld [vmem:[#allocation7 + $0x38] sm:$0xff]  ;;  %v323_v24 = vld [vmem:[%s624_s2] ss:$0 sm:$0xff] }
  0x3e   :  { %402 = vmatprep.subr.bf16.mxu1 %v494_v1  ;;  %v409_v23 = vpack.c.bf16 %v183_v22, %v182_v21  ;;  %v327_v37 = vld [vmem:[%s626_s4] ss:$0 sm:$0xff] }
  0x3f   :  { %v331_v41 = vld [vmem:[%s627_s5] ss:$0 sm:$0xff] }
  0x40   :  { %398 = vmatpush3.bf16.msra.mxu0 %v397_v10  ;;  %v332_v57 = vld [vmem:[#allocation2] ss:$0 sm:$0xff] }
  0x41   :  { %404 = vmatpush3.bf16.msra.mxu1 %v403_v14 }
  0x42   :  { %405 = vmatprep.subr.bf16.mxu1 %v494_v1 }
  0x43   :  { %360 = vmatmul.mubr.msk.f32.vlgmr.msra.gmra.mrb[0].mxu0 %vm83_vm1, %v69_v17 }
  0x44   :  { %362 = vmatprep.mubr.msk.f32.mxu0 %vm495_vm0, %v496_v2 }
  0x45   :  { %407 = vmatpush3.bf16.msra.mxu1 %v406_v18 }
  0x46   :  { %408 = vmatprep.subr.bf16.mxu1 %v494_v1 }
  0x47   :  { %363 = vmatmul.mubr.msk.f32.gmra.mrb[2].mxu0 %vm83_vm1, %v70_v19 }
  0x48   :  { %365 = vmatprep.mubr.msk.f32.mxu0 %vm495_vm0, %v496_v2 }
  0x49   :  { %410 = vmatpush3.bf16.msra.mxu1 %v409_v23 }
  0x4b   :  { %366 = vmatmul.mubr.msk.f32.gmra.mrb[4].mxu0 %vm83_vm1, %v71_v20 }
 0x116   :  { %v159_v25 = vpop.f32.mrb[0].mxu0 }
 0x117   :  { %v160_v26 = vadd.f32 %v323_v24, %v159_v25  ;;  %v361_v27 = vpop.f32.mrb[1].mxu0 }
 0x119   :  { %v173_v28 = vmax.f32 %v160_v26, 0.0 }
 0x11a   :  { %v164_v29 = vpop.f32.mrb[2].mxu0 }
 0x11b   :  { %v165_v30 = vadd.f32 %v323_v24, %v164_v29  ;;  %v364_v31 = vpop.f32.mrb[3].mxu0  ;;  %385 = vmatmul.mubr.msk.f32.vlgmr.msra.gmra.mrb[0].mxu1 %vm191_vm2, %v173_v28 }
 0x11c   :  { %387 = vmatprep.mubr.msk.f32.mxu1 %vm495_vm0, %v496_v2 }
 0x11d   :  { %v174_v32 = vmax.f32 %v165_v30, 0.0 }
 0x11e   :  { %v169_v33 = vpop.f32.mrb[4].mxu0 }
 0x11f   :  { %v170_v34 = vadd.f32 %v323_v24, %v169_v33  ;;  %v367_v35 = vpop.f32.mrb[5].mxu0  ;;  %388 = vmatmul.mubr.msk.f32.gmra.mrb[2].mxu1 %vm191_vm2, %v174_v32 }
 0x120   :  { %390 = vmatprep.mubr.msk.f32.mxu1 %vm495_vm0, %v496_v2 }
 0x121   :  { %v175_v36 = vmax.f32 %v170_v34, 0.0 }
 0x123   :  { %391 = vmatmul.mubr.msk.f32.gmra.mrb[4].mxu1 %vm191_vm2, %v175_v36 }
 0x1ee   :  { %v267_v38 = vpop.f32.mrb[0].mxu1 }
 0x1ef   :  { %v268_v39 = vadd.f32 %v327_v37, %v267_v38  ;;  %v386_v40 = vpop.f32.mrb[1].mxu1 }
 0x1f1   :  { %v281_v42 = vmax.f32 %v268_v39, 0.0 }
 0x1f2   :  { %v272_v43 = vpop.f32.mrb[2].mxu1 }
 0x1f3   :  { %v273_v44 = vadd.f32 %v327_v37, %v272_v43  ;;  %v389_v45 = vpop.f32.mrb[3].mxu1  ;;  %v291_v46 = vmul.f32 %v331_v41, %v281_v42 }
 0x1f5   :  { %v282_v47 = vmax.f32 %v273_v44, 0.0  ;;  %v294_v48 = vsel %vm191_vm2, %v291_v46, 0.0 }
 0x1f6   :  { %295 = vadd.xlane.f32.xlu0 %v294_v48  ;;  %v277_v49 = vpop.f32.mrb[4].mxu1 }
 0x1f7   :  { %v278_v50 = vadd.f32 %v327_v37, %v277_v49  ;;  %v392_v51 = vpop.f32.mrb[5].mxu1  ;;  %v292_v52 = vmul.f32 %v331_v41, %v282_v47 }
 0x1f9   :  { %v283_v53 = vmax.f32 %v278_v50, 0.0  ;;  %v297_v54 = vsel %vm191_vm2, %v292_v52, 0.0 }
 0x1fa   :  { %298 = vadd.xlane.f32.xlu0 %v297_v54 }
 0x1fb   :  { %v293_v55 = vmul.f32 %v331_v41, %v283_v53 }
 0x1fd   :  { %v300_v56 = vsel %vm191_vm2, %v293_v55, 0.0 }
 0x1fe   :  { %301 = vadd.xlane.f32.xlu1 %v300_v56 }
 0x283   :  { %v296_v58 = vpop.xlane.xlu0 %295 }
 0x284   :  { %v310_v59 = vadd.f32 %v332_v57, %v296_v58 }
 0x286   :  { %314 = vst.msk [vmem:[%s629_s7] sm:$0xff] %vm313_vm3, %v310_v59 }
 0x287   :  { %v299_v60 = vpop.xlane.xlu0 %298 }
 0x288   :  { %v311_v61 = vadd.f32 %v332_v57, %v299_v60 }
 0x28a   :  { %315 = vst.msk [vmem:[%s629_s7 + $0x8] sm:$0xff] %vm313_vm3, %v311_v61 }
 0x28b   :  { %v302_v62 = vpop.xlane.xlu1 %301 }
 0x28c   :  { %v312_v63 = vadd.f32 %v332_v57, %v302_v62 }
 0x28e   :  { %316 = vst.msk [vmem:[%s629_s7 + $0x10] sm:$0xff] %vm313_vm3, %v312_v63 }
 0x28f   :  { %321 = vsyncpa [#allocation4], 1 }
 0x290   :  { %322 = vsyncpa [#allocation6], 1 }

</bundles_post_ra>
